<compile_context>
chip_gen: v7x
topology: tpu7x:2x2x1
jax: 0.10.0
libtpu: 0.0.40
codegen_flags: <defaults>
</compile_context>

<pallas_src>
import jax
import jax.numpy as jnp
from jax.experimental import pallas as pl
from jax.experimental.pallas import tpu as pltpu


def _round_up(n, m):
    return ((n + m - 1) // m) * m


def _cdiv(a, b):
    return (a + b - 1) // b


# ---------------------------------------------------------------------------
# Kernel: one batch tile of Bt rows, full sequence T.
# ---------------------------------------------------------------------------
def attn_kernel(x_ref, w1_ref, b1_ref, w2_ref, b2_ref, attn_ref):
    """scores = ReLU(x @ W1 + b1) . w2 + b2 per row, softmax over T.

    x_ref    : (Bt*T, H)  encoder-output rows (batch-major, row-flattened)
    w1_ref   : (H, 24)
    b1_ref   : (1, 24)
    w2_ref   : (1, 24)    Linear(24->1) weight passed as a row
    b2_ref   : (1, 1)     scalar bias in SMEM
    attn_ref : (Bt, T)    lane-dense attention weights for this tile
    """
    Bt, T = attn_ref.shape
    K = w1_ref.shape[1]  # 24

    # Row-batched first linear on the MXU: (Bt*T, H) @ (H, 24), f32 accumulate.
    h = jnp.dot(x_ref[...], w1_ref[...], preferred_element_type=jnp.float32)
    h = jnp.maximum(h + b1_ref[...], 0.0)                       # ReLU, (Bt*T, 24)

    # Degenerate Linear(24 -> 1): keep it off the MXU -- VPU multiply against
    # the (1, 24) weight row, then an XLU lane reduce.
    s = (h * w2_ref[...]).reshape(Bt, T, K)
    scores = jnp.sum(s, axis=-1) + b2_ref[0, 0]                 # (Bt, T)

    # Softmax over the sequence axis (lanes), numerically stabilized.
    m = jnp.max(scores, axis=-1, keepdims=True)                 # (Bt, 1)
    p = jnp.exp(scores - m)                                      # (Bt, T)
    denom = jnp.sum(p, axis=-1, keepdims=True)                   # (Bt, 1)
    attn_ref[...] = (p * pl.reciprocal(denom, approx=False)).astype(attn_ref.dtype)


# ---------------------------------------------------------------------------
# Wrapper
# ---------------------------------------------------------------------------
_VMEM_DATA_BUDGET = 40 * 1024 * 1024   # resident data budget (fits v7x 64 MiB w/ headroom)
_VMEM_LIMIT_CAP = 56 * 1024 * 1024     # scoped-VMEM request cap (under v7x physical)


def attn_forward(x, w1, b1, w2, b2):
    """Pallas implementation of Attn.forward.

    x: (B, T, H) encoder outputs (batch-first), float32 or bfloat16.
    Returns attention weights of shape (B, T, 1), matching the PyTorch module.
    """
    B, T, H = x.shape
    K = w1.shape[1]  # 24
    itemsize = jnp.dtype(x.dtype).itemsize

    # --- VMEM-budget-driven batch tile -------------------------------------
    # Per batch row resident in VMEM:
    #   x tile (double-buffered)        : 2 * T * H * itemsize
    #   h / s intermediates (f32, 24 -> : 3 * T * 128 * 4   (lane-padded; one
    #     128 lane padding, + relayout)                      spare for relayout)
    #   output tile (double-buffered)   : 2 * T * 4
    per_row = 2 * T * H * itemsize + 3 * T * 128 * 4 + 2 * T * 4
    bt_budget = max(8, (_VMEM_DATA_BUDGET // per_row) // 8 * 8)

    # Keep >= 2 (>= 4) grid steps for larger batches so the 'parallel' axis can
    # be load-balanced across TensorCores (v7x megacore) and the DMA pipeline
    # has work to overlap.
    if B >= 32:
        bt_target = _round_up(_cdiv(B, 4), 8)
    elif B >= 16:
        bt_target = _round_up(_cdiv(B, 2), 8)
    else:
        bt_target = _round_up(B, 8)
    Bt = max(8, min(bt_budget, bt_target))
    nblk = _cdiv(B, Bt)

    # Scoped-VMEM limit: actual need (+25%) clamped to [32 MiB, 56 MiB] -- above
    # the 16/32 MiB defaults, under v7x's 64 MiB physical VMEM.
    need = Bt * per_row + 2 * H * 128 * 4 + 4 * 128 * 4 + (1 << 20)
    vmem_limit = int(min(max(need * 5 // 4, 32 * 1024 * 1024), _VMEM_LIMIT_CAP))

    # --- operands ----------------------------------------------------------
    # Contiguous flatten is free (no HBM copy, no dtype cast): the kernel sees
    # a 2-D (Bt*T, H) row block, so the big x tile never needs an in-kernel
    # relayout, regardless of T % 8.
    xr = x.reshape(B * T, H)
    w1_m = w1.astype(x.dtype)                          # MXU operands match x dtype
    b1_2d = b1.reshape(1, K).astype(jnp.float32)       # (1, 24)
    w2_row = w2.reshape(1, K).astype(jnp.float32)      # (24, 1) -> (1, 24)
    b2_2d = b2.reshape(1, 1).astype(jnp.float32)       # scalar, lives in SMEM

    # Deeper input buffering only when tiles are tiny and there are several
    # grid steps to overlap (never triggered for a single-step grid).
    x_tile_bytes = Bt * T * H * itemsize
    if nblk >= 3 and x_tile_bytes < (1 << 20):
        x_spec = pl.BlockSpec((Bt * T, H), lambda b: (b, 0),
                              pipeline_mode=pl.Buffered(3))
    else:
        x_spec = pl.BlockSpec((Bt * T, H), lambda b: (b, 0))

    grid_spec = pltpu.PrefetchScalarGridSpec(
        num_scalar_prefetch=0,
        grid=(nblk,),
        in_specs=[
            x_spec,                                              # x rows (ragged last block OK)
            pl.BlockSpec((H, K), lambda b: (0, 0)),              # w1 (resident)
            pl.BlockSpec((1, K), lambda b: (0, 0)),              # b1
            pl.BlockSpec((1, K), lambda b: (0, 0)),              # w2 as a row
            pl.BlockSpec(memory_space=pltpu.MemorySpace.SMEM),   # b2 scalar
        ],
        out_specs=pl.BlockSpec((Bt, T), lambda b: (b, 0)),       # lane-dense attn
    )

    attn2d = pl.pallas_call(
        attn_kernel,
        out_shape=jax.ShapeDtypeStruct((nblk * Bt, T), x.dtype),
        grid_spec=grid_spec,
        compiler_params=pltpu.CompilerParams(
            dimension_semantics=("parallel",),
            vmem_limit_bytes=vmem_limit),
    )(xr, w1_m, b1_2d, w2_row, b2_2d)

    # Match the PyTorch module's output shape: (B, T, 1).
    return attn2d[:B].reshape(B, T, 1)


def reference(x, w1, b1, w2, b2):
    """Plain-JAX reference matching the PyTorch Attn.forward."""
    B, T, H = x.shape
    s = jnp.maximum(x.reshape(-1, H) @ w1 + b1, 0.0) @ w2 + b2   # (B*T, 1)
    return jax.nn.softmax(s.reshape(B, T), axis=1)[..., None]    # (B, T, 1)


if __name__ == "__main__":
    B, T, H = 2, 8, 32

    key = jax.random.PRNGKey(0)
    k = jax.random.split(key, 5)
    x = jax.random.normal(k[0], (B, T, H), dtype=jnp.float32)
    # Attn.main: Linear(h_dim, 24), ReLU, Linear(24, 1)
    w1 = jax.random.normal(k[1], (H, 24), dtype=jnp.float32) * 0.1
    b1 = jax.random.normal(k[2], (24,), dtype=jnp.float32) * 0.1
    w2 = jax.random.normal(k[3], (24, 1), dtype=jnp.float32) * 0.1
    b2 = jax.random.normal(k[4], (1,), dtype=jnp.float32) * 0.1

    attn = attn_forward(x, w1, b1, w2, b2)
    jax.block_until_ready(attn)

    ref = reference(x, w1, b1, w2, b2)
    assert attn.shape == (B, T, 1), f"bad output shape {attn.shape}"
    assert jnp.allclose(attn, ref, atol=1e-5, rtol=1e-5), "attn mismatch"

    print("KERNEL_OK")
</pallas_src>

<mosaic_0001>
module attributes {stable_mosaic.version = 11 : i64} {
  func.func @attn_kernel(%arg0: i32, %arg1: memref<64x32xf32, #tpu.memory_space<vmem>>, %arg2: memref<32x24xf32, #tpu.memory_space<vmem>>, %arg3: memref<1x24xf32, #tpu.memory_space<vmem>>, %arg4: memref<1x24xf32, #tpu.memory_space<vmem>>, %arg5: memref<1x1xf32, #tpu.memory_space<smem>>, %arg6: memref<8x8xf32, #tpu.memory_space<vmem>>) attributes {dimension_semantics = [#tpu.dimension_semantics<parallel>], iteration_bounds = array<i64: 1>, scalar_prefetch = 0 : i64, scratch_operands = 0 : i64, tpu.core_type = #tpu.core_type<tc>, window_params = [{transform_indices = @transform_0, window_bounds = array<i64: 64, 32>}, {pipeline_mode = #tpu.pipeline_mode<synchronous>, transform_indices = @transform_1, window_bounds = array<i64: 32, 24>}, {pipeline_mode = #tpu.pipeline_mode<synchronous>, transform_indices = @transform_2, window_bounds = array<i64: 1, 24>}, {pipeline_mode = #tpu.pipeline_mode<synchronous>, transform_indices = @transform_3, window_bounds = array<i64: 1, 24>}, {transform_indices = @transform_4, window_bounds = array<i64: 1, 1>}, {transform_indices = @transform_5, window_bounds = array<i64: 8, 8>}]} {
    %c0 = arith.constant 0 : index
    %c0_0 = arith.constant 0 : index
    %0 = vector.load %arg1[%c0, %c0_0] : memref<64x32xf32, #tpu.memory_space<vmem>>, vector<64x32xf32>
    %c0_1 = arith.constant 0 : index
    %c0_2 = arith.constant 0 : index
    %1 = vector.load %arg2[%c0_1, %c0_2] : memref<32x24xf32, #tpu.memory_space<vmem>>, vector<32x24xf32>
    %cst = arith.constant dense<0.000000e+00> : vector<64x24xf32>
    %2 = tpu.matmul %0, %1, %cst {dimension_numbers = #tpu.dot_dimension_numbers<[1], [0], [0], [1], [0, 0, 1, 1], [], []>} : vector<64x32xf32>, vector<32x24xf32>, vector<64x24xf32> -> vector<64x24xf32>
    %c0_3 = arith.constant 0 : index
    %c0_4 = arith.constant 0 : index
    %3 = vector.load %arg3[%c0_3, %c0_4] : memref<1x24xf32, #tpu.memory_space<vmem>>, vector<1x24xf32>
    %4 = vector.broadcast %3 : vector<1x24xf32> to vector<64x24xf32>
    %5 = arith.addf %2, %4 : vector<64x24xf32>
    %cst_5 = arith.constant 0.000000e+00 : f32
    %6 = vector.broadcast %cst_5 : f32 to vector<64x24xf32>
    %7 = arith.maximumf %5, %6 : vector<64x24xf32>
    %c0_6 = arith.constant 0 : index
    %c0_7 = arith.constant 0 : index
    %8 = vector.load %arg4[%c0_6, %c0_7] : memref<1x24xf32, #tpu.memory_space<vmem>>, vector<1x24xf32>
    %9 = vector.broadcast %8 : vector<1x24xf32> to vector<64x24xf32>
    %10 = arith.mulf %7, %9 : vector<64x24xf32>
    %11 = vector.shape_cast %10 : vector<64x24xf32> to vector<8x8x24xf32>
    %cst_8 = arith.constant dense<0.000000e+00> : vector<8x8xf32>
    %12 = vector.multi_reduction <add>, %11, %cst_8 [2] : vector<8x8x24xf32> to vector<8x8xf32>
    %c0_9 = arith.constant 0 : index
    %c0_10 = arith.constant 0 : index
    %13 = memref.load %arg5[%c0_9, %c0_10] : memref<1x1xf32, #tpu.memory_space<smem>>
    %14 = vector.broadcast %13 : f32 to vector<8x8xf32>
    %15 = arith.addf %12, %14 : vector<8x8xf32>
    %cst_11 = arith.constant dense<0xFF800000> : vector<8xf32>
    %16 = vector.multi_reduction <maximumf>, %15, %cst_11 [1] : vector<8x8xf32> to vector<8xf32>
    %17 = vector.shape_cast %16 : vector<8xf32> to vector<8x1xf32>
    %18 = vector.broadcast %17 : vector<8x1xf32> to vector<8x8xf32>
    %19 = arith.subf %15, %18 : vector<8x8xf32>
    %20 = math.exp %19 : vector<8x8xf32>
    %cst_12 = arith.constant dense<0.000000e+00> : vector<8xf32>
    %21 = vector.multi_reduction <add>, %20, %cst_12 [1] : vector<8x8xf32> to vector<8xf32>
    %22 = vector.shape_cast %21 : vector<8xf32> to vector<8x1xf32>
    %23 = tpu.reciprocal %22 : vector<8x1xf32> -> vector<8x1xf32>
    %24 = vector.broadcast %23 : vector<8x1xf32> to vector<8x8xf32>
    %25 = arith.mulf %20, %24 : vector<8x8xf32>
    %c0_13 = arith.constant 0 : index
    %c0_14 = arith.constant 0 : index
    %26 = vector.load %arg6[%c0_13, %c0_14] : memref<8x8xf32, #tpu.memory_space<vmem>>, vector<8x8xf32>
    tpu.vector_store %arg6[%c0_13, %c0_14], %25 {strides = array<i32>} : memref<8x8xf32, #tpu.memory_space<vmem>>, vector<8x8xf32>,
    return
  }
  func.func @transform_0(%arg0: i32) -> (i32, i32) {
    %c0_i32 = arith.constant 0 : i32
    %c0_i32_0 = arith.constant 0 : i32
    return %arg0, %c0_i32 : i32, i32
  }
  func.func @transform_1(%arg0: i32) -> (i32, i32) {
    %c0_i32 = arith.constant 0 : i32
    %c0_i32_0 = arith.constant 0 : i32
    %c0_i32_1 = arith.constant 0 : i32
    return %c0_i32, %c0_i32_0 : i32, i32
  }
  func.func @transform_2(%arg0: i32) -> (i32, i32) {
    %c0_i32 = arith.constant 0 : i32
    %c0_i32_0 = arith.constant 0 : i32
    %c0_i32_1 = arith.constant 0 : i32
    return %c0_i32, %c0_i32_0 : i32, i32
  }
  func.func @transform_3(%arg0: i32) -> (i32, i32) {
    %c0_i32 = arith.constant 0 : i32
    %c0_i32_0 = arith.constant 0 : i32
    %c0_i32_1 = arith.constant 0 : i32
    return %c0_i32, %c0_i32_0 : i32, i32
  }
  func.func @transform_4(%arg0: i32) -> (i32, i32) {
    %c0_i32 = arith.constant 0 : i32
    %c0_i32_0 = arith.constant 0 : i32
    %c0_i32_1 = arith.constant 0 : i32
    return %c0_i32, %c0_i32_0 : i32, i32
  }
  func.func @transform_5(%arg0: i32) -> (i32, i32) {
    %c0_i32 = arith.constant 0 : i32
    %c0_i32_0 = arith.constant 0 : i32
    return %arg0, %c0_i32 : i32, i32
  }
}

</mosaic_0001>

<bundles_post_ra>
// kernel: tpu_custom_call.1
= control target key start
LH: loop header
LB: loop body
LE: loop exit
PB: predicated region body
PF: predicated region fallthrough
CT: control target
= control target key end

     0   :  { %vm41_vm0 = vcmask 261120   ;;  %s877_s0 = inlined_call_operand.vmem [shape: f32[16,32], index: 0, kind: input, shape index: {}]   ;;  %s878_s1 = inlined_call_operand.vmem [shape: f32[32,24], index: 1, kind: input, shape index: {}]   ;;  %s879_s2 = inlined_call_operand.vmem [shape: f32[1,24], index: 2, kind: input, shape index: {}]   ;;  %s880_s3 = inlined_call_operand.vmem [shape: f32[1,24], index: 3, kind: input, shape index: {}]   ;;  %s881_s4 = inlined_call_operand.<no memory space> [shape: f32[1,1], index: 4, kind: input, shape index: {}]   ;;  %s882_s5 = inlined_call_operand.hbm [shape: f32[8,8], index: 5, kind: output, shape index: {}]  }
   0x1   :  { %v30_v0 = vld [vmem:[%s878_s1] sm:$0xff]  ;;  %v31_v1 = vld [vmem:[%s878_s1 + $0x8] sm:$0xff]  ;;  %v32_v2 = vld [vmem:[%s878_s1 + $0x10] sm:$0xff] }
   0x2   :  { %v609_v3 = vpack.c.bf16 %v31_v1, %v30_v0  ;;  %v33_v4 = vld [vmem:[%s878_s1 + $0x18] sm:$0xff]  ;;  %v22_v5 = vld [vmem:[%s877_s0] sm:$0xff] }
   0x3   :  { %v613_v6 = vpack.c.bf16 %v33_v4, %v32_v2  ;;  %597 = vmatprep.mubr.msk.f32.mxu0 %vm41_vm0, %v22_v5  ;;  %v26_v7 = vld [vmem:[%s877_s0 + $0x20] sm:$0xff] }
   0x4   :  { %610 = vmatprep.subr.bf16.mxu0 %v609_v3  ;;  %617 = vmatprep.subr.bf16.mxu1 %v609_v3 }
   0x5   :  { %612 = vmatpush3.bf16.msra.mxu0 %v609_v3  ;;  %619 = vmatpush3.bf16.msra.mxu1 %v609_v3 }
   0x6   :  { %11 = vsyncpa [#allocation4], 0  ;;  %614 = vmatprep.subr.bf16.mxu0 %v613_v6  ;;  %618 = vmatprep.subr.bf16.mxu1 %v613_v6  ;;  %v23_v8 = vld [vmem:[%s877_s0 + $0x8] sm:$0xff]  ;;  %v24_v10 = vld [vmem:[%s877_s0 + $0x10] sm:$0xff]  ;;  %vm194_vm1 = vcmask 195584   ;;  %v237_v56 = vlaneseq  ;;  %v220_v60 = vstv %s881_s4  ;;  %vm271_vm2 = vcmask 1041409  }
   0x7   :  { %603 = vmatprep.mubr.msk.f32.mxu1 %vm41_vm0, %v26_v7  ;;  %v27_v9 = vld [vmem:[%s877_s0 + $0x28] sm:$0xff]  ;;  %v28_v11 = vld [vmem:[%s877_s0 + $0x30] sm:$0xff]  ;;  %v25_v12 = vld [vmem:[%s877_s0 + $0x18] sm:$0xff]  ;;  %vm273_vm3 = vcmask 1042434   ;;  %vm275_vm4 = vcmask 1043459   ;;  %vm277_vm5 = vcmask 1044484  }
   0x8   :  { %v29_v13 = vld [vmem:[%s877_s0 + $0x38] sm:$0xff]  ;;  %v567_v14 = vld [vmem:[%s879_s2] ss:$0 sm:$0xff]  ;;  %v238_v58 = vand.u32 127, %v237_v56  ;;  %v757_v59 = vshrl.u32 %v237_v56, 7  ;;  %vm279_vm6 = vcmask 1045509  }
   0x9   :  { %616 = vmatpush3.bf16.msra.mxu0 %v613_v6  ;;  %620 = vmatpush3.bf16.msra.mxu1 %v613_v6  ;;  %v576_v21 = vld [vmem:[%s880_s3] ss:$0 sm:$0xff]  ;;  %vm281_vm7 = vcmask 1046534   ;;  %vm283_vm8 = vcmask 1047559   ;;  %vm286_vm9 = vcmask 64512   ;;  %s668_s3 = smov [#allocation3]  }
   0xa   :  { %v763_v0 = vsub.s32 %v238_v58, %v757_v59  ;;  %s559_s4 = sshll.u32 %s668_s3, 4  ;;  %s560_s4 = int_to_ptr.vmem [resolvable:$true] %s559_s4 }
   0xb   :  { %s643_s20 = scalar_lea.vmem %s560_s4, 128  ;;  %p648_p1 = scmp.lt.s32.totalorder %s560_s4, %s560_s4 }
   0xc   :  { %598 = vmatmul.mubr.msk.f32.vlgmr.msra.gmra.mrb[0].mxu0 %vm41_vm0, %v23_v8  ;;  %604 = vmatmul.mubr.msk.f32.vlgmr.msra.gmra.mrb[0].mxu1 %vm41_vm0, %v27_v9  ;;  %p644_p0 = scmp.ne.s32.totalorder %s560_s4, %s643_s20  ;;  %p649_p2 = scmp.lt.s32.totalorder %s643_s20, %s643_s20 }
   0xd   :  { %600 = vmatprep.mubr.msk.f32.mxu0 %vm41_vm0, %v24_v10  ;;  %606 = vmatprep.mubr.msk.f32.mxu1 %vm41_vm0, %v28_v11 }
   0xe   :  { %p650_p3 = por %p649_p2, %p648_p1 }
  0x10   :  { %601 = vmatmul.mubr.msk.f32.gmra.mrb[2].mxu0 %vm41_vm0, %v25_v12  ;;  %607 = vmatmul.mubr.msk.f32.gmra.mrb[2].mxu1 %vm41_vm0, %v29_v13  ;;  %p651_p4 = pnand %p650_p3, %p644_p0 }
  0xdf   :  { %v599_v15 = vpop.f32.mrb[0].mxu0  ;;  %v605_v16 = vpop.f32.mrb[0].mxu1 }
  0xe0   :  { %v138_v17 = vadd.f32 %v599_v15, %v567_v14  ;;  %v132_v18 = vpop.f32.mrb[1].mxu0  ;;  %v152_v19 = vpop.f32.mrb[1].mxu1  ;;  %v158_v33 = vadd.f32 %v605_v16, %v567_v14 }
  0xe1   :  { %v133_v20 = vadd.f32 %v567_v14, %v132_v18  ;;  %v153_v22 = vadd.f32 %v567_v14, %v152_v19 }
  0xe2   :  { %v172_v23 = vmax.f32 %v138_v17, 0.0  ;;  %v176_v42 = vmax.f32 %v158_v33, 0.0  ;;  %v305_v33 = vsub.s32 3, %v757_v59 }
  0xe3   :  { %v171_v24 = vmax.f32 %v133_v20, 0.0  ;;  %v602_v25 = vpop.f32.mrb[2].mxu0  ;;  %v608_v26 = vpop.f32.mrb[2].mxu1  ;;  %v175_v30 = vmax.f32 %v153_v22, 0.0 }
  0xe4   :  { %v148_v27 = vadd.f32 %v602_v25, %v567_v14  ;;  %v142_v28 = vpop.f32.mrb[3].mxu0  ;;  %v187_v29 = vmul.f32 %v576_v21, %v172_v23  ;;  %v162_v31 = vpop.f32.mrb[3].mxu1  ;;  %v168_v43 = vadd.f32 %v608_v26, %v567_v14  ;;  %v191_v51 = vmul.f32 %v576_v21, %v176_v42 }
  0xe5   :  { %v143_v32 = vadd.f32 %v567_v14, %v142_v28  ;;  %v163_v34 = vadd.f32 %v567_v14, %v162_v31  ;;  %v186_v37 = vmul.f32 %v576_v21, %v171_v24  ;;  %v190_v41 = vmul.f32 %v576_v21, %v175_v30 }
  0xe6   :  { %v174_v35 = vmax.f32 %v148_v27, 0.0  ;;  %v198_v36 = vsel %vm194_vm1, %v187_v29, 0.0  ;;  %v178_v49 = vmax.f32 %v168_v43, 0.0  ;;  %v210_v53 = vsel %vm194_vm1, %v191_v51, 0.0 }
  0xe7   :  { %v173_v38 = vmax.f32 %v143_v32, 0.0  ;;  %199 = vadd.xlane.f32.xlu0 %v198_v36  ;;  %v177_v40 = vmax.f32 %v163_v34, 0.0  ;;  %v195_v45 = vsel %vm194_vm1, %v186_v37, 0.0  ;;  %v207_v47 = vsel %vm194_vm1, %v190_v41, 0.0 }
  0xe8   :  { %v189_v39 = vmul.f32 %v576_v21, %v174_v35  ;;  %v193_v54 = vmul.f32 %v576_v21, %v178_v49  ;;  %v667_v29 = vmov 0   ;;  %v293_v30 = vsub.s32 0, %v757_v59 }
  0xe9   :  { %v188_v46 = vmul.f32 %v576_v21, %v173_v38  ;;  %v192_v48 = vmul.f32 %v576_v21, %v177_v40  ;;  %624 = vset.pattern.permute.xlu0 %v667_v29  ;;  %623 = vset.pattern.permute.xlu1 %v667_v29  ;;  %v297_v31 = vsub.s32 1, %v757_v59  ;;  %v301_v32 = vsub.s32 2, %v757_v59 }
  0xea   :  { %v204_v44 = vsel %vm194_vm1, %v189_v39, 0.0  ;;  %v216_v55 = vsel %vm194_vm1, %v193_v54, 0.0  ;;  %v309_v38 = vsub.s32 4, %v757_v59  ;;  %v317_v49 = vsub.s32 6, %v757_v59 }
  0xeb   :  { %205 = vadd.xlane.f32.xlu1 %v204_v44  ;;  %196 = vadd.xlane.f32.xlu0 %v195_v45  ;;  %v201_v50 = vsel %vm194_vm1, %v188_v46, 0.0  ;;  %v213_v52 = vsel %vm194_vm1, %v192_v48, 0.0  ;;  %v313_v45 = vsub.s32 5, %v757_v59 }
  0xef   :  { %202 = vadd.xlane.f32.xlu1 %v201_v50  ;;  %208 = vadd.xlane.f32.xlu0 %v207_v47 }
  0xf3   :  { %211 = vadd.xlane.f32.xlu1 %v210_v53  ;;  %214 = vadd.xlane.f32.xlu0 %v213_v52  ;;  %v321_v53 = vsub.s32 7, %v757_v59 }
  0xf7   :  { %217 = vadd.xlane.f32.xlu1 %v216_v55 }
 0x174   :  { %v200_v57 = vpop.xlane.xlu0 %199 }
 0x175   :  { %v222_v1 = vadd.f32 %v220_v60, %v200_v57 }
 0x177   :  { %v246_v8 = vrot.slane %v222_v1, %v763_v0 }
 0x178   :  { %v206_v61 = vpop.xlane.xlu1 %205  ;;  %v197_v62 = vpop.xlane.xlu0 %196 }
 0x179   :  { %v221_v63 = vadd.f32 %v220_v60, %v197_v62  ;;  %v765_v2 = vadd.f32 %v220_v60, %v206_v61 }
 0x17b   :  { %v242_v3 = vrot.slane %v221_v63, %v763_v0  ;;  %v254_v11 = vrot.slane %v765_v2, %v763_v0 }
 0x17c   :  { %v203_v4 = vpop.xlane.xlu1 %202  ;;  %v209_v5 = vpop.xlane.xlu0 %208 }
 0x17d   :  { %v223_v6 = vadd.f32 %v220_v60, %v203_v4  ;;  %v768_v7 = vadd.f32 %v220_v60, %v209_v5  ;;  %v272_v12 = vsel %vm271_vm2, %v246_v8, %v242_v3 }
 0x17f   :  { %v250_v9 = vrot.slane %v223_v6, %v763_v0  ;;  %v258_v10 = vrot.slane %v768_v7, %v763_v0 }
 0x180   :  { %v212_v13 = vpop.xlane.xlu1 %211  ;;  %v215_v14 = vpop.xlane.xlu0 %214 }
 0x181   :  { %v274_v15 = vsel %vm273_vm3, %v250_v9, %v272_v12  ;;  %v226_v16 = vadd.f32 %v220_v60, %v212_v13  ;;  %v778_v17 = vadd.f32 %v220_v60, %v215_v14 }
 0x182   :  { %v276_v18 = vsel %vm275_vm4, %v254_v11, %v274_v15 }
 0x183   :  { %v278_v19 = vsel %vm277_vm5, %v258_v10, %v276_v18  ;;  %v262_v20 = vrot.slane %v226_v16, %v763_v0  ;;  %v266_v21 = vrot.slane %v778_v17, %v763_v0 }
 0x184   :  { %v218_v22 = vpop.xlane.xlu1 %217 }
 0x185   :  { %v228_v23 = vadd.f32 %v220_v60, %v218_v22  ;;  %v280_v24 = vsel %vm279_vm6, %v262_v20, %v278_v19 }
 0x186   :  { %v282_v26 = vsel %vm281_vm7, %v266_v21, %v280_v24 }
 0x187   :  { %v270_v25 = vrot.slane %v228_v23, %v763_v0 }
 0x189   :  { %v284_v27 = vsel %vm283_vm8, %v270_v25, %v282_v26 }
 0x18a   :  { %v287_v28 = vsel %vm286_vm9, %v284_v27, -inf }
 0x18b   :  { %288 = vmax.xlane.f32.xlu0 %v287_v28 }
 0x218   :  { %v289_v34 = vpop.xlane.xlu0 %288 }
 0x219   :  { %v294_v35 = vrot.slane %v289_v34, %v293_v30  ;;  %v298_v36 = vrot.slane %v289_v34, %v297_v31  ;;  %v302_v37 = vrot.slane %v289_v34, %v301_v32  ;;  %v306_v39 = vrot.slane %v289_v34, %v305_v33 }
 0x21a   :  { %v310_v46 = vrot.slane %v289_v34, %v309_v38  ;;  %v314_v50 = vrot.slane %v289_v34, %v313_v45  ;;  %v318_v54 = vrot.slane %v289_v34, %v317_v49  ;;  %v322_v60 = vrot.slane %v289_v34, %v321_v53 }
 0x21b   :  { %v331_v40 = vsub.f32 %v221_v63, %v294_v35  ;;  %v332_v41 = vsub.f32 %v222_v1, %v298_v36  ;;  %v333_v42 = vsub.f32 %v223_v6, %v302_v37  ;;  %v334_v47 = vsub.f32 %v765_v2, %v306_v39 }
 0x21c   :  { %v335_v51 = vsub.f32 %v768_v7, %v310_v46  ;;  %v336_v55 = vsub.f32 %v226_v16, %v314_v50  ;;  %v337_v61 = vsub.f32 %v778_v17, %v318_v54  ;;  %v338_v1 = vsub.f32 %v228_v23, %v322_v60 }
 0x21d   :  { %v339_v43 = vmul.f32 1.442695, %v331_v40  ;;  %v341_v44 = vmul.f32 1.442695, %v332_v41  ;;  %v343_v48 = vmul.f32 1.442695, %v333_v42 }
 0x21e   :  { %v345_v52 = vmul.f32 1.442695, %v334_v47  ;;  %v347_v56 = vmul.f32 1.442695, %v335_v51  ;;  %v349_v62 = vmul.f32 1.442695, %v336_v55 }
 0x21f   :  { %625 = vpow2.f32 %v339_v43  ;;  %v351_v2 = vmul.f32 1.442695, %v337_v61  ;;  %v353_v4 = vmul.f32 1.442695, %v338_v1 }
 0x220   :  { %627 = vpow2.f32 %v341_v44 }
 0x221   :  { %629 = vpow2.f32 %v343_v48 }
 0x222   :  { %631 = vpow2.f32 %v345_v52 }
 0x223   :  { %633 = vpow2.f32 %v347_v56 }
 0x224   :  { %635 = vpow2.f32 %v349_v62 }
 0x225   :  { %637 = vpow2.f32 %v351_v2 }
 0x226   :  { %639 = vpow2.f32 %v353_v4 }
 0x229   :  { %v626_v57 = vpop.eup %625 }
 0x22a   :  { %v628_v58 = vpop.eup %627  ;;  %364 = vperm.xlu1 %623, %v626_v57  }
 0x22b   :  { %367 = vperm.xlu0 %624, %v628_v58   ;;  %v630_v63 = vpop.eup %629 }
 0x22c   :  { %v632_v3 = vpop.eup %631 }
 0x22d   :  { %v634_v5 = vpop.eup %633 }
 0x22e   :  { %370 = vperm.xlu1 %623, %v630_v63   ;;  %v636_v6 = vpop.eup %635 }
 0x22f   :  { %v638_v7 = vpop.eup %637 }
 0x230   :  { %v640_v8 = vpop.eup %639 }
 0x232   :  { %373 = vperm.xlu1 %623, %v632_v3  }
 0x236   :  { %376 = vperm.xlu1 %623, %v634_v5  }
 0x23a   :  { %379 = vperm.xlu1 %623, %v636_v6  }
 0x23e   :  { %382 = vperm.xlu1 %623, %v638_v7  }
 0x242   :  { %385 = vperm.xlu1 %623, %v640_v8  }
 0x2a9   :  { %v365_v9 = vpop.permute.xlu1 %364 }
 0x2aa   :  { %v368_v13 = vpop.permute.xlu0 %367  ;;  %v390_v16 = vrot.slane %v365_v9, %v763_v0 }
 0x2ab   :  { %v394_v15 = vrot.slane %v368_v13, %v763_v0 }
 0x2ad   :  { %v371_v10 = vpop.permute.xlu1 %370  ;;  %v419_v21 = vsel %vm271_vm2, %v394_v15, %v390_v16 }
 0x2ae   :  { %v398_v17 = vrot.slane %v371_v10, %v763_v0 }
 0x2b0   :  { %v420_v23 = vsel %vm273_vm3, %v398_v17, %v419_v21 }
 0x2b1   :  { %v374_v11 = vpop.permute.xlu1 %373 }
 0x2b2   :  { %v402_v18 = vrot.slane %v374_v11, %v763_v0 }
 0x2b4   :  { %v421_v25 = vsel %vm275_vm4, %v402_v18, %v420_v23 }
 0x2b5   :  { %v377_v12 = vpop.permute.xlu1 %376 }
 0x2b6   :  { %v406_v19 = vrot.slane %v377_v12, %v763_v0 }
 0x2b8   :  { %v422_v26 = vsel %vm277_vm5, %v406_v19, %v421_v25 }
 0x2b9   :  { %v380_v14 = vpop.permute.xlu1 %379 }
 0x2ba   :  { %v410_v22 = vrot.slane %v380_v14, %v763_v0 }
 0x2bc   :  { %v423_v28 = vsel %vm279_vm6, %v410_v22, %v422_v26 }
 0x2bd   :  { %v383_v20 = vpop.permute.xlu1 %382 }
 0x2be   :  { %v414_v24 = vrot.slane %v383_v20, %v763_v0 }
 0x2c0   :  { %v424_v34 = vsel %vm281_vm7, %v414_v24, %v423_v28 }
 0x2c1   :  { %v386_v27 = vpop.permute.xlu1 %385 }
 0x2c2   :  { %v418_v29 = vrot.slane %v386_v27, %v763_v0 }
 0x2c4   :  { %v425_v35 = vsel %vm283_vm8, %v418_v29, %v424_v34 }
 0x2c5   :  { %v427_v36 = vsel %vm286_vm9, %v425_v35, 0.0 }
 0x2c6   :  { %428 = vadd.xlane.f32.xlu1 %v427_v36 }
 0x353   :  { %v429_v37 = vpop.xlane.xlu1 %428 }
 0x354   :  { %641 = vrcp.f32 %v429_v37 }
 0x35e   :  { %v642_v39 = vpop.eup %641 }
 0x35f   :  { %v435_v40 = vrot.slane %v642_v39, %v293_v30  ;;  %v439_v42 = vrot.slane %v642_v39, %v297_v31  ;;  %v443_v44 = vrot.slane %v642_v39, %v301_v32  ;;  %v447_v47 = vrot.slane %v642_v39, %v305_v33 }
 0x360   :  { %v451_v50 = vrot.slane %v642_v39, %v309_v38  ;;  %v455_v31 = vrot.slane %v642_v39, %v313_v45  ;;  %v459_v32 = vrot.slane %v642_v39, %v317_v49  ;;  %v463_v33 = vrot.slane %v642_v39, %v321_v53 }
 0x361   :  { %v472_v41 = vmul.f32 %v626_v57, %v435_v40  ;;  %v473_v43 = vmul.f32 %v628_v58, %v439_v42  ;;  %v474_v46 = vmul.f32 %v630_v63, %v443_v44  ;;  %v475_v48 = vmul.f32 %v632_v3, %v447_v47 }
 0x362   :  { %v476_v30 = vmul.f32 %v634_v5, %v451_v50  ;;  %v477_v51 = vmul.f32 %v636_v6, %v455_v31  ;;  %v478_v52 = vmul.f32 %v638_v7, %v459_v32  ;;  %v479_v54 = vmul.f32 %v640_v8, %v463_v33 }
 0x363   :  { %489 = vperm.xlu0 %624, %v472_v41  }
 0x367   :  { %492 = vperm.xlu0 %624, %v473_v43  }
 0x36b   :  { %495 = vperm.xlu0 %624, %v474_v46  }
 0x36f   :  { %498 = vperm.xlu0 %624, %v475_v48  }
 0x373   :  { %501 = vperm.xlu0 %624, %v476_v30  }
 0x377   :  { %504 = vperm.xlu0 %624, %v477_v51  }
 0x37b   :  { %507 = vperm.xlu0 %624, %v478_v52  }
 0x37f   :  { %510 = vperm.xlu0 %624, %v479_v54  }
 0x3e2   :  { %v490_v55 = vpop.permute.xlu0 %489 }
 0x3e3   :  { %v515_v49 = vrot.slane %v490_v55, %v763_v0 }
 0x3e6   :  { %v493_v38 = vpop.permute.xlu0 %492 }
 0x3e7   :  { %v519_v45 = vrot.slane %v493_v38, %v763_v0 }
 0x3e9   :  { %v544_v63 = vsel %vm271_vm2, %v519_v45, %v515_v49 }
 0x3ea   :  { %v496_v56 = vpop.permute.xlu0 %495 }
 0x3eb   :  { %v523_v61 = vrot.slane %v496_v56, %v763_v0 }
 0x3ed   :  { %v545_v2 = vsel %vm273_vm3, %v523_v61, %v544_v63 }
 0x3ee   :  { %v499_v57 = vpop.permute.xlu0 %498 }
 0x3ef   :  { %v527_v62 = vrot.slane %v499_v57, %v763_v0 }
 0x3f1   :  { %v546_v4 = vsel %vm275_vm4, %v527_v62, %v545_v2 }
 0x3f2   :  { %v502_v58 = vpop.permute.xlu0 %501 }
 0x3f3   :  { %v531_v59 = vrot.slane %v502_v58, %v763_v0 }
 0x3f5   :  { %v547_v5 = vsel %vm277_vm5, %v531_v59, %v546_v4 }
 0x3f6   :  { %v505_v60 = vpop.permute.xlu0 %504 }
 0x3f7   :  { %v535_v1 = vrot.slane %v505_v60, %v763_v0 }
 0x3f9   :  { %v548_v7 = vsel %vm279_vm6, %v535_v1, %v547_v5 }
 0x3fa   :  { %v508_v53 = vpop.permute.xlu0 %507 }
 0x3fb   :  { %v539_v3 = vrot.slane %v508_v53, %v763_v0 }
 0x3fd   :  { %v549_v9 = vsel %vm281_vm7, %v539_v3, %v548_v7 }
 0x3fe   :  { %v511_v6 = vpop.permute.xlu0 %510 }
 0x3ff   :  { %v543_v8 = vrot.slane %v511_v6, %v763_v0 }
 0x401   :  { %v550_v10 = vsel %vm283_vm8, %v543_v8, %v549_v9 }
 0x402   :  { %552 = vst.msk [vmem:[#allocation3] sm:$0xff] %vm286_vm9, %v550_v10 }
 0x403   :  { %654 = shalt.err (!%p651_p4)
}
 0x404   :  { %s655_s23 = scalar_lea.hbm %s882_s5, 128 }
 0x405   :  { %p656_p5 = scmp.ne.s32.totalorder %s882_s5, %s655_s23  ;;  %p659_p6 = scmp.lt.u32.totalorder %s655_s23, %s882_s5 }
 0x407   :  { %p661_p7 = pnand %p659_p6, %p656_p5 }
 0x409   :  { %664 = shalt.err (!%p661_p7)
}
 0x40a   :  { %562 = dma.vmem_to_hbm [thread:$0]  %s560_s4, 128, %s882_s5, [#allocation4]  }
 0x40b   :  { %665 = dma.done.wait [#allocation4], 128  }
 0x40c   :  { %666 = vsyncadd [#allocation4], 4294967168 }
 0x40d   :  { %566 = vsyncpa [#allocation4], 1 }

</bundles_post_ra>
